<compile_context>
chip_gen: v7x
topology: tpu7x:2x2x1
jax: 0.10.0
libtpu: 0.0.40
codegen_flags: <defaults>
</compile_context>

<pallas_src>
import functools

import jax
import jax.numpy as jnp
from jax.experimental import pallas as pl
from jax.experimental.pallas import tpu as pltpu


def _round_up(x, m):
    return ((x + m - 1) // m) * m


# ----------------------------------------------------------------------------
# Backbone kernel: conv(im2col matmul) + ReLU + spatial partial-sum (GAP)
# ----------------------------------------------------------------------------

def _backbone_kernel(cols_ref, cw_ref, cb_ref, part_ref, acc_ref):
    """Grid = (sample, spatial_tile).

    cols_ref: (1, THW, KPAD) bf16   im2col rows of one spatial tile of a sample
    cw_ref  : (KPAD, HPAD)  bf16    conv weight
    cb_ref  : (1, HPAD)     f32     conv bias
    part_ref: (1, 8, HPAD)  f32     per-sample partial spatial sums (output)
    acc_ref : (8, HPAD)     f32     VPU accumulator (scratch)
    """
    t = pl.program_id(1)
    nt = pl.num_programs(1)

    @pl.when(t == 0)
    def _():
        acc_ref[...] = jnp.zeros_like(acc_ref)

    h = jnp.dot(cols_ref[0], cw_ref[...], preferred_element_type=jnp.float32)
    h = jnp.maximum(h + cb_ref[...], 0.0)                    # (THW, HPAD) f32
    thw, hpad = h.shape
    # Fold THW rows into 8 sublanes with plain vreg adds (VPU, no XLU work).
    acc_ref[...] += jnp.sum(h.reshape(thw // 8, 8, hpad), axis=0)

    @pl.when(t == nt - 1)
    def _():
        part_ref[0] = acc_ref[...]                           # dense (8,128) f32 store


def backbone_pallas(cols, cw, cb, *, hw, thw):
    """cols: (NSAMP, HW, KPAD) bf16 -> (NSAMP, 8, HPAD) f32 partial spatial sums."""
    nsamp, hw_in, kpad = cols.shape
    assert hw_in == hw and hw % thw == 0 and thw % 8 == 0
    hpad = cw.shape[1]
    nsp = hw // thw

    flops = 2 * nsamp * hw * kpad * hpad
    bytes_accessed = int(cols.size * 2 + cw.size * 2 + cb.size * 4
                         + nsamp * 8 * hpad * 4)

    # VMEM budget from actual block sizes (double-buffered cols + out) + slack.
    vmem = int(2 * (thw * kpad * 2)          # cols blocks (bf16, double buffered)
               + 2 * (kpad * hpad * 2)       # conv weight (double buffered)
               + 2 * (hpad * 4)              # conv bias
               + 2 * (8 * hpad * 4)          # output block
               + 8 * hpad * 4                # accumulator scratch
               + (4 << 20))                  # headroom for staged h / spills
    vmem = max(16 << 20, min(vmem, 48 << 20))  # cap below v7x's 64 MiB physical

    return pl.pallas_call(
        _backbone_kernel,
        out_shape=jax.ShapeDtypeStruct((nsamp, 8, hpad), jnp.float32),
        grid_spec=pltpu.PrefetchScalarGridSpec(
            num_scalar_prefetch=0,
            grid=(nsamp, nsp),
            in_specs=[
                pl.BlockSpec((1, thw, kpad), lambda s, t: (s, t, 0)),
                pl.BlockSpec((kpad, hpad), lambda s, t: (0, 0)),
                pl.BlockSpec((1, hpad), lambda s, t: (0, 0)),
            ],
            out_specs=pl.BlockSpec((1, 8, hpad), lambda s, t: (s, 0, 0)),
            scratch_shapes=[pltpu.VMEM((8, hpad), jnp.float32)],
        ),
        compiler_params=pltpu.CompilerParams(
            dimension_semantics=("parallel", "arbitrary"),
            vmem_limit_bytes=vmem,
        ),
        cost_estimate=pl.CostEstimate(
            flops=flops, transcendentals=0, bytes_accessed=bytes_accessed),
    )(cols, cw, cb)


# ----------------------------------------------------------------------------
# Heads kernel: finish GAP, batched fc_feat + ReLU, both FC heads (scale
# folded into weights) — one call.
# ----------------------------------------------------------------------------

def _heads_kernel(pc_ref, pf_ref, fw_ref, fb_ref, w1c_ref, w1f_ref, b1_ref,
                  w2_ref, b2_ref, out_ref, out2_ref, *, inv_hw):
    # Finish global-average-pool: single 8->1 cross-sublane reduce per sample.
    pooled_c = jnp.sum(pc_ref[...], axis=1) * inv_hw         # (BP, HPAD) f32
    pooled_f = jnp.sum(pf_ref[...], axis=1) * inv_hw

    fw = fw_ref[...]
    fb = fb_ref[...]
    feat_c = jnp.maximum(
        jnp.dot(pooled_c.astype(jnp.bfloat16), fw,
                preferred_element_type=jnp.float32) + fb, 0.0).astype(jnp.bfloat16)
    feat_f = jnp.maximum(
        jnp.dot(pooled_f.astype(jnp.bfloat16), fw,
                preferred_element_type=jnp.float32) + fb, 0.0).astype(jnp.bfloat16)

    # cat(close, full) @ W1 == close @ W1_close + full @ W1_full.
    out_ref[...] = (jnp.dot(feat_c, w1c_ref[...], preferred_element_type=jnp.float32)
                    + jnp.dot(feat_f, w1f_ref[...], preferred_element_type=jnp.float32)
                    + b1_ref[...])
    out2_ref[...] = (jnp.dot(feat_c, w2_ref[...], preferred_element_type=jnp.float32)
                     + b2_ref[...])


def heads_pallas(part_close, part_full, fw, fb, w1c, w1f, b1, w2, b2, *, inv_hw):
    bpad = part_close.shape[0]
    hpad = part_close.shape[2]
    fpad = fw.shape[1]
    opad = w1c.shape[1]

    def fullspec(shape):
        n = len(shape)
        return pl.BlockSpec(shape, lambda i, _n=n: (0,) * _n)

    kernel = functools.partial(_heads_kernel, inv_hw=inv_hw)
    return pl.pallas_call(
        kernel,
        out_shape=(jax.ShapeDtypeStruct((bpad, opad), jnp.float32),
                   jax.ShapeDtypeStruct((bpad, opad), jnp.float32)),
        grid_spec=pltpu.PrefetchScalarGridSpec(
            num_scalar_prefetch=0,
            grid=(1,),
            in_specs=[
                fullspec((bpad, 8, hpad)),
                fullspec((bpad, 8, hpad)),
                fullspec((hpad, fpad)),
                fullspec((1, fpad)),
                fullspec((fpad, opad)),
                fullspec((fpad, opad)),
                fullspec((1, opad)),
                fullspec((fpad, opad)),
                fullspec((1, opad)),
            ],
            out_specs=(fullspec((bpad, opad)), fullspec((bpad, opad))),
        ),
        compiler_params=pltpu.CompilerParams(
            dimension_semantics=("arbitrary",)),
    )(part_close, part_full, fw, fb, w1c, w1f, b1, w2, b2)


# ----------------------------------------------------------------------------
# Glue: im2col, parameter padding, full forward
# ----------------------------------------------------------------------------

def im2col(x_nhwc, kh, kw, stride, pad):
    """(B,H,W,C) -> (B, OH*OW, KH*KW*C), plus OH, OW."""
    x = jnp.pad(x_nhwc, ((0, 0), (pad, pad), (pad, pad), (0, 0)))
    B, H, W, C = x.shape
    oh = (H - kh) // stride + 1
    ow = (W - kw) // stride + 1
    cols = []
    for i in range(kh):
        for j in range(kw):
            cols.append(x[:, i:i + oh * stride:stride,
                          j:j + ow * stride:stride, :])
    patches = jnp.concatenate(cols, axis=-1)                 # (B, OH, OW, 9C)
    return patches.reshape(B, oh * ow, kh * kw * C), oh, ow


def init_params(key, c_in, hidden, in_ch, out_dim):
    ks = jax.random.split(key, 8)
    s = 0.05
    return {
        "conv_w": s * jax.random.normal(ks[0], (3 * 3 * c_in, hidden), jnp.float32),
        "conv_b": s * jax.random.normal(ks[1], (hidden,), jnp.float32),
        "fc_feat_w": s * jax.random.normal(ks[2], (hidden, in_ch), jnp.float32),
        "fc_feat_b": s * jax.random.normal(ks[3], (in_ch,), jnp.float32),
        "fc_cf_w": s * jax.random.normal(ks[4], (2 * in_ch, out_dim), jnp.float32),
        "fc_cf_b": s * jax.random.normal(ks[5], (out_dim,), jnp.float32),
        "fc_c_w": s * jax.random.normal(ks[6], (in_ch, out_dim), jnp.float32),
        "fc_c_b": s * jax.random.normal(ks[7], (out_dim,), jnp.float32),
    }


def _pad2(w, r, c):
    return jnp.pad(w, ((0, r - w.shape[0]), (0, c - w.shape[1])))


def _pad1(b, n):
    return jnp.pad(b, (0, n - b.shape[0]))


def pad_params(p, c_in, hidden, in_ch, out_dim):
    """Pad weights for lane-dense MXU tiles; fold the /5 into head weights.

    K (im2col) is padded only to the bf16 sublane multiple (16) — not 128 —
    since the cols/conv_w blocks cover the full padded dim.  Matmul N dims are
    padded to 128 (toy dims are tiny; pad to 256 for v6e/v7x at real sizes).
    All pads are zeros so padded feature columns stay exactly zero.
    """
    kpad = _round_up(3 * 3 * c_in, 16)
    hpad = _round_up(hidden, 128)
    fpad = _round_up(in_ch, 128)
    opad = _round_up(out_dim, 128)
    scale = 1.0 / 5.0   # dropout-loop "/ len(self.dropouts)" pre-folded
    return {
        "conv_w": _pad2(p["conv_w"], kpad, hpad).astype(jnp.bfloat16),
        "conv_b": _pad1(p["conv_b"], hpad).reshape(1, hpad).astype(jnp.float32),
        "fc_feat_w": _pad2(p["fc_feat_w"], hpad, fpad).astype(jnp.bfloat16),
        "fc_feat_b": _pad1(p["fc_feat_b"], fpad).reshape(1, fpad).astype(jnp.float32),
        "w1c": _pad2(p["fc_cf_w"][:in_ch] * scale, fpad, opad).astype(jnp.bfloat16),
        "w1f": _pad2(p["fc_cf_w"][in_ch:] * scale, fpad, opad).astype(jnp.bfloat16),
        "fc_cf_b": _pad1(p["fc_cf_b"] * scale, opad).reshape(1, opad).astype(jnp.float32),
        "fc_c_w": _pad2(p["fc_c_w"] * scale, fpad, opad).astype(jnp.bfloat16),
        "fc_c_b": _pad1(p["fc_c_b"] * scale, opad).reshape(1, opad).astype(jnp.float32),
    }


def forward(close, full, pp, *, out_dim, thw=None):
    B = close.shape[0]
    # Batch close + full through one backbone pass (sample axis = 2B, even ->
    # balanced across both TensorCores when megacore is available).
    x = jnp.concatenate([close, full], axis=0)               # (2B, C, H, W)
    x = jnp.transpose(x, (0, 2, 3, 1))                       # NCHW -> NHWC
    cols, oh, ow = im2col(x, 3, 3, 2, 1)                     # (2B, HW, 9C)
    hw = oh * ow
    if thw is None:
        thw = hw                                             # nsp = 1
    kpad = pp["conv_w"].shape[0]
    cols = jnp.pad(cols, ((0, 0), (0, 0), (0, kpad - cols.shape[-1])))
    cols = cols.astype(jnp.bfloat16)

    part = backbone_pallas(cols, pp["conv_w"], pp["conv_b"],
                           hw=hw, thw=thw)                   # (2B, 8, HPAD) f32

    bpad = _round_up(B, 8)
    part_close = jnp.pad(part[:B], ((0, bpad - B), (0, 0), (0, 0)))
    part_full = jnp.pad(part[B:], ((0, bpad - B), (0, 0), (0, 0)))

    out_p, out2_p = heads_pallas(part_close, part_full,
                                 pp["fc_feat_w"], pp["fc_feat_b"],
                                 pp["w1c"], pp["w1f"], pp["fc_cf_b"],
                                 pp["fc_c_w"], pp["fc_c_b"],
                                 inv_hw=1.0 / hw)
    return out_p[:B, :out_dim], out2_p[:B, :out_dim]


def reference_forward(close, full, p):
    """Pure-JAX f32 reference with identical synthetic-backbone semantics."""
    def backbone(x):
        xn = jnp.transpose(x, (0, 2, 3, 1))
        cols, _, _ = im2col(xn, 3, 3, 2, 1)
        h = jnp.maximum(cols @ p["conv_w"] + p["conv_b"], 0.0)
        pooled = jnp.mean(h, axis=1)
        return jnp.maximum(pooled @ p["fc_feat_w"] + p["fc_feat_b"], 0.0)

    cf = backbone(close)
    ff = backbone(full)
    out = (jnp.concatenate([cf, ff], axis=1) @ p["fc_cf_w"] + p["fc_cf_b"]) / 5.0
    out2 = (cf @ p["fc_c_w"] + p["fc_c_b"]) / 5.0
    return out, out2


if __name__ == "__main__":
    B, C_IN, H, W = 2, 4, 16, 16
    HIDDEN, IN_CH, OUT_DIM = 32, 32, 8

    key = jax.random.PRNGKey(0)
    k_close, k_full, k_params = jax.random.split(key, 3)

    close = jax.random.normal(k_close, (B, C_IN, H, W), jnp.float32)
    full = jax.random.normal(k_full, (B, C_IN, H, W), jnp.float32)
    params = init_params(k_params, C_IN, HIDDEN, IN_CH, OUT_DIM)
    pparams = pad_params(params, C_IN, HIDDEN, IN_CH, OUT_DIM)

    fwd = jax.jit(functools.partial(forward, out_dim=OUT_DIM))
    out, out2 = fwd(close, full, pparams)
    jax.block_until_ready((out, out2))

    assert out.shape == (B, OUT_DIM) and out2.shape == (B, OUT_DIM)
    assert bool(jnp.all(jnp.isfinite(out))) and bool(jnp.all(jnp.isfinite(out2)))

    # Loose numeric check vs. f32 reference (bf16 matmuls are a deliberate
    # precision trade, so tolerance is generous).
    ref_out, ref_out2 = reference_forward(close, full, params)
    err1 = float(jnp.max(jnp.abs(out - ref_out)))
    err2 = float(jnp.max(jnp.abs(out2 - ref_out2)))
    assert err1 < 5e-3 and err2 < 5e-3, (err1, err2)

    print("KERNEL_OK")
</pallas_src>

<mosaic_0001>
module attributes {stable_mosaic.version = 11 : i64} {
  func.func @_backbone_kernel(%arg0: i32, %arg1: i32, %arg2: memref<1x64x48xbf16, #tpu.memory_space<vmem>>, %arg3: memref<48x128xbf16, #tpu.memory_space<vmem>>, %arg4: memref<1x128xf32, #tpu.memory_space<vmem>>, %arg5: memref<1x8x128xf32, #tpu.memory_space<vmem>>, %arg6: memref<8x128xf32, #tpu.memory_space<vmem>>) attributes {dimension_semantics = [#tpu.dimension_semantics<parallel>, #tpu.dimension_semantics<arbitrary>], iteration_bounds = array<i64: 4, 1>, scalar_prefetch = 0 : i64, scratch_operands = 1 : i64, tpu.core_type = #tpu.core_type<tc>, window_params = [{transform_indices = @transform_0, window_bounds = array<i64: 1, 64, 48>}, {pipeline_mode = #tpu.pipeline_mode<synchronous>, transform_indices = @transform_1, window_bounds = array<i64: 48, 128>}, {pipeline_mode = #tpu.pipeline_mode<synchronous>, transform_indices = @transform_2, window_bounds = array<i64: 1, 128>}, {transform_indices = @transform_3, window_bounds = array<i64: 1, 8, 128>}]} {
    %c0_i32 = arith.constant 0 : i32
    %0 = arith.cmpi eq, %arg1, %c0_i32 : i32
    %1 = arith.extui %0 : i1 to i32
    %c0_i32_0 = arith.constant 0 : i32
    %2 = arith.cmpi ne, %1, %c0_i32_0 : i32
    scf.if %2 {
      %cst_15 = arith.constant 0.000000e+00 : f32
      %20 = vector.broadcast %cst_15 : f32 to vector<8x128xf32>
      %c0_16 = arith.constant 0 : index
      %c0_17 = arith.constant 0 : index
      %21 = vector.load %arg6[%c0_16, %c0_17] : memref<8x128xf32, #tpu.memory_space<vmem>>, vector<8x128xf32>
      tpu.vector_store %arg6[%c0_16, %c0_17], %20 {strides = array<i32>} : memref<8x128xf32, #tpu.memory_space<vmem>>, vector<8x128xf32>,
    } else {
    }
    %c0 = arith.constant 0 : index
    %c0_1 = arith.constant 0 : index
    %c0_2 = arith.constant 0 : index
    %3 = vector.load %arg2[%c0, %c0_1, %c0_2] : memref<1x64x48xbf16, #tpu.memory_space<vmem>>, vector<1x64x48xbf16>
    %4 = vector.shape_cast %3 : vector<1x64x48xbf16> to vector<64x48xbf16>
    %c0_3 = arith.constant 0 : index
    %c0_4 = arith.constant 0 : index
    %5 = vector.load %arg3[%c0_3, %c0_4] : memref<48x128xbf16, #tpu.memory_space<vmem>>, vector<48x128xbf16>
    %cst = arith.constant dense<0.000000e+00> : vector<64x128xf32>
    %6 = tpu.matmul %4, %5, %cst {dimension_numbers = #tpu.dot_dimension_numbers<[1], [0], [0], [1], [0, 0, 1, 1], [], []>} : vector<64x48xbf16>, vector<48x128xbf16>, vector<64x128xf32> -> vector<64x128xf32>
    %c0_5 = arith.constant 0 : index
    %c0_6 = arith.constant 0 : index
    %7 = vector.load %arg4[%c0_5, %c0_6] : memref<1x128xf32, #tpu.memory_space<vmem>>, vector<1x128xf32>
    %8 = vector.broadcast %7 : vector<1x128xf32> to vector<64x128xf32>
    %9 = arith.addf %6, %8 : vector<64x128xf32>
    %cst_7 = arith.constant 0.000000e+00 : f32
    %10 = vector.broadcast %cst_7 : f32 to vector<64x128xf32>
    %11 = arith.maximumf %9, %10 : vector<64x128xf32>
    %c0_8 = arith.constant 0 : index
    %c0_9 = arith.constant 0 : index
    %12 = vector.load %arg6[%c0_8, %c0_9] : memref<8x128xf32, #tpu.memory_space<vmem>>, vector<8x128xf32>
    %13 = vector.shape_cast %11 : vector<64x128xf32> to vector<8x8x128xf32>
    %cst_10 = arith.constant dense<0.000000e+00> : vector<8x128xf32>
    %14 = vector.multi_reduction <add>, %13, %cst_10 [0] : vector<8x8x128xf32> to vector<8x128xf32>
    %15 = arith.addf %12, %14 : vector<8x128xf32>
    %c0_11 = arith.constant 0 : index
    %c0_12 = arith.constant 0 : index
    %16 = vector.load %arg6[%c0_11, %c0_12] : memref<8x128xf32, #tpu.memory_space<vmem>>, vector<8x128xf32>
    tpu.vector_store %arg6[%c0_11, %c0_12], %15 {strides = array<i32>} : memref<8x128xf32, #tpu.memory_space<vmem>>, vector<8x128xf32>,
    %c0_i32_13 = arith.constant 0 : i32
    %17 = arith.cmpi eq, %arg1, %c0_i32_13 : i32
    %18 = arith.extui %17 : i1 to i32
    %c0_i32_14 = arith.constant 0 : i32
    %19 = arith.cmpi ne, %18, %c0_i32_14 : i32
    scf.if %19 {
      %c0_15 = arith.constant 0 : index
      %c0_16 = arith.constant 0 : index
      %20 = vector.load %arg6[%c0_15, %c0_16] : memref<8x128xf32, #tpu.memory_space<vmem>>, vector<8x128xf32>
      %c0_17 = arith.constant 0 : index
      %c0_18 = arith.constant 0 : index
      %c0_19 = arith.constant 0 : index
      %21 = vector.load %arg5[%c0_17, %c0_18, %c0_19] : memref<1x8x128xf32, #tpu.memory_space<vmem>>, vector<1x8x128xf32>
      %22 = vector.shape_cast %21 : vector<1x8x128xf32> to vector<8x128xf32>
      %23 = vector.shape_cast %20 : vector<8x128xf32> to vector<1x8x128xf32>
      tpu.vector_store %arg5[%c0_17, %c0_18, %c0_19], %23 {strides = array<i32>} : memref<1x8x128xf32, #tpu.memory_space<vmem>>, vector<1x8x128xf32>,
    } else {
    }
    return
  }
  func.func @transform_0(%arg0: i32, %arg1: i32) -> (i32, i32, i32) {
    %c0_i32 = arith.constant 0 : i32
    %c0_i32_0 = arith.constant 0 : i32
    return %arg0, %arg1, %c0_i32 : i32, i32, i32
  }
  func.func @transform_1(%arg0: i32, %arg1: i32) -> (i32, i32) {
    %c0_i32 = arith.constant 0 : i32
    %c0_i32_0 = arith.constant 0 : i32
    %c0_i32_1 = arith.constant 0 : i32
    return %c0_i32, %c0_i32_0 : i32, i32
  }
  func.func @transform_2(%arg0: i32, %arg1: i32) -> (i32, i32) {
    %c0_i32 = arith.constant 0 : i32
    %c0_i32_0 = arith.constant 0 : i32
    %c0_i32_1 = arith.constant 0 : i32
    return %c0_i32, %c0_i32_0 : i32, i32
  }
  func.func @transform_3(%arg0: i32, %arg1: i32) -> (i32, i32, i32) {
    %c0_i32 = arith.constant 0 : i32
    %c0_i32_0 = arith.constant 0 : i32
    %c0_i32_1 = arith.constant 0 : i32
    return %arg0, %c0_i32, %c0_i32_0 : i32, i32, i32
  }
}

module attributes {stable_mosaic.version = 11 : i64} {
  func.func @_heads_kernel(%arg0: i32, %arg1: memref<8x8x128xf32, #tpu.memory_space<vmem>>, %arg2: memref<8x8x128xf32, #tpu.memory_space<vmem>>, %arg3: memref<128x128xbf16, #tpu.memory_space<vmem>>, %arg4: memref<1x128xf32, #tpu.memory_space<vmem>>, %arg5: memref<128x128xbf16, #tpu.memory_space<vmem>>, %arg6: memref<128x128xbf16, #tpu.memory_space<vmem>>, %arg7: memref<1x128xf32, #tpu.memory_space<vmem>>, %arg8: memref<128x128xbf16, #tpu.memory_space<vmem>>, %arg9: memref<1x128xf32, #tpu.memory_space<vmem>>, %arg10: memref<8x128xf32, #tpu.memory_space<vmem>>, %arg11: memref<8x128xf32, #tpu.memory_space<vmem>>) attributes {dimension_semantics = [#tpu.dimension_semantics<arbitrary>], iteration_bounds = array<i64: 1>, scalar_prefetch = 0 : i64, scratch_operands = 0 : i64, tpu.core_type = #tpu.core_type<tc>, window_params = [{pipeline_mode = #tpu.pipeline_mode<synchronous>, transform_indices = @transform_0, window_bounds = array<i64: 8, 8, 128>}, {pipeline_mode = #tpu.pipeline_mode<synchronous>, transform_indices = @transform_1, window_bounds = array<i64: 8, 8, 128>}, {pipeline_mode = #tpu.pipeline_mode<synchronous>, transform_indices = @transform_2, window_bounds = array<i64: 128, 128>}, {pipeline_mode = #tpu.pipeline_mode<synchronous>, transform_indices = @transform_3, window_bounds = array<i64: 1, 128>}, {pipeline_mode = #tpu.pipeline_mode<synchronous>, transform_indices = @transform_4, window_bounds = array<i64: 128, 128>}, {pipeline_mode = #tpu.pipeline_mode<synchronous>, transform_indices = @transform_5, window_bounds = array<i64: 128, 128>}, {pipeline_mode = #tpu.pipeline_mode<synchronous>, transform_indices = @transform_6, window_bounds = array<i64: 1, 128>}, {pipeline_mode = #tpu.pipeline_mode<synchronous>, transform_indices = @transform_7, window_bounds = array<i64: 128, 128>}, {pipeline_mode = #tpu.pipeline_mode<synchronous>, transform_indices = @transform_8, window_bounds = array<i64: 1, 128>}, {pipeline_mode = #tpu.pipeline_mode<synchronous>, transform_indices = @transform_9, window_bounds = array<i64: 8, 128>}, {pipeline_mode = #tpu.pipeline_mode<synchronous>, transform_indices = @transform_10, window_bounds = array<i64: 8, 128>}]} {
    %c0 = arith.constant 0 : index
    %c0_0 = arith.constant 0 : index
    %c0_1 = arith.constant 0 : index
    %0 = vector.load %arg1[%c0, %c0_0, %c0_1] : memref<8x8x128xf32, #tpu.memory_space<vmem>>, vector<8x8x128xf32>
    %cst = arith.constant dense<0.000000e+00> : vector<8x128xf32>
    %1 = vector.multi_reduction <add>, %0, %cst [1] : vector<8x8x128xf32> to vector<8x128xf32>
    %cst_2 = arith.constant 1.562500e-02 : f32
    %2 = vector.broadcast %cst_2 : f32 to vector<8x128xf32>
    %3 = arith.mulf %1, %2 : vector<8x128xf32>
    %c0_3 = arith.constant 0 : index
    %c0_4 = arith.constant 0 : index
    %c0_5 = arith.constant 0 : index
    %4 = vector.load %arg2[%c0_3, %c0_4, %c0_5] : memref<8x8x128xf32, #tpu.memory_space<vmem>>, vector<8x8x128xf32>
    %cst_6 = arith.constant dense<0.000000e+00> : vector<8x128xf32>
    %5 = vector.multi_reduction <add>, %4, %cst_6 [1] : vector<8x8x128xf32> to vector<8x128xf32>
    %cst_7 = arith.constant 1.562500e-02 : f32
    %6 = vector.broadcast %cst_7 : f32 to vector<8x128xf32>
    %7 = arith.mulf %5, %6 : vector<8x128xf32>
    %c0_8 = arith.constant 0 : index
    %c0_9 = arith.constant 0 : index
    %8 = vector.load %arg3[%c0_8, %c0_9] : memref<128x128xbf16, #tpu.memory_space<vmem>>, vector<128x128xbf16>
    %c0_10 = arith.constant 0 : index
    %c0_11 = arith.constant 0 : index
    %9 = vector.load %arg4[%c0_10, %c0_11] : memref<1x128xf32, #tpu.memory_space<vmem>>, vector<1x128xf32>
    %10 = arith.truncf %3 : vector<8x128xf32> to vector<8x128xbf16>
    %cst_12 = arith.constant dense<0.000000e+00> : vector<8x128xf32>
    %11 = tpu.matmul %10, %8, %cst_12 {dimension_numbers = #tpu.dot_dimension_numbers<[1], [0], [0], [1], [0, 0, 1, 1], [], []>} : vector<8x128xbf16>, vector<128x128xbf16>, vector<8x128xf32> -> vector<8x128xf32>
    %12 = vector.broadcast %9 : vector<1x128xf32> to vector<8x128xf32>
    %13 = arith.addf %11, %12 : vector<8x128xf32>
    %cst_13 = arith.constant 0.000000e+00 : f32
    %14 = vector.broadcast %cst_13 : f32 to vector<8x128xf32>
    %15 = arith.maximumf %13, %14 : vector<8x128xf32>
    %16 = arith.truncf %15 : vector<8x128xf32> to vector<8x128xbf16>
    %17 = arith.truncf %7 : vector<8x128xf32> to vector<8x128xbf16>
    %cst_14 = arith.constant dense<0.000000e+00> : vector<8x128xf32>
    %18 = tpu.matmul %17, %8, %cst_14 {dimension_numbers = #tpu.dot_dimension_numbers<[1], [0], [0], [1], [0, 0, 1, 1], [], []>} : vector<8x128xbf16>, vector<128x128xbf16>, vector<8x128xf32> -> vector<8x128xf32>
    %19 = vector.broadcast %9 : vector<1x128xf32> to vector<8x128xf32>
    %20 = arith.addf %18, %19 : vector<8x128xf32>
    %cst_15 = arith.constant 0.000000e+00 : f32
    %21 = vector.broadcast %cst_15 : f32 to vector<8x128xf32>
    %22 = arith.maximumf %20, %21 : vector<8x128xf32>
    %23 = arith.truncf %22 : vector<8x128xf32> to vector<8x128xbf16>
    %c0_16 = arith.constant 0 : index
    %c0_17 = arith.constant 0 : index
    %24 = vector.load %arg5[%c0_16, %c0_17] : memref<128x128xbf16, #tpu.memory_space<vmem>>, vector<128x128xbf16>
    %cst_18 = arith.constant dense<0.000000e+00> : vector<8x128xf32>
    %25 = tpu.matmul %16, %24, %cst_18 {dimension_numbers = #tpu.dot_dimension_numbers<[1], [0], [0], [1], [0, 0, 1, 1], [], []>} : vector<8x128xbf16>, vector<128x128xbf16>, vector<8x128xf32> -> vector<8x128xf32>
    %c0_19 = arith.constant 0 : index
    %c0_20 = arith.constant 0 : index
    %26 = vector.load %arg6[%c0_19, %c0_20] : memref<128x128xbf16, #tpu.memory_space<vmem>>, vector<128x128xbf16>
    %cst_21 = arith.constant dense<0.000000e+00> : vector<8x128xf32>
    %27 = tpu.matmul %23, %26, %cst_21 {dimension_numbers = #tpu.dot_dimension_numbers<[1], [0], [0], [1], [0, 0, 1, 1], [], []>} : vector<8x128xbf16>, vector<128x128xbf16>, vector<8x128xf32> -> vector<8x128xf32>
    %28 = arith.addf %25, %27 : vector<8x128xf32>
    %c0_22 = arith.constant 0 : index
    %c0_23 = arith.constant 0 : index
    %29 = vector.load %arg7[%c0_22, %c0_23] : memref<1x128xf32, #tpu.memory_space<vmem>>, vector<1x128xf32>
    %30 = vector.broadcast %29 : vector<1x128xf32> to vector<8x128xf32>
    %31 = arith.addf %28, %30 : vector<8x128xf32>
    %c0_24 = arith.constant 0 : index
    %c0_25 = arith.constant 0 : index
    %32 = vector.load %arg10[%c0_24, %c0_25] : memref<8x128xf32, #tpu.memory_space<vmem>>, vector<8x128xf32>
    tpu.vector_store %arg10[%c0_24, %c0_25], %31 {strides = array<i32>} : memref<8x128xf32, #tpu.memory_space<vmem>>, vector<8x128xf32>,
    %c0_26 = arith.constant 0 : index
    %c0_27 = arith.constant 0 : index
    %33 = vector.load %arg8[%c0_26, %c0_27] : memref<128x128xbf16, #tpu.memory_space<vmem>>, vector<128x128xbf16>
    %cst_28 = arith.constant dense<0.000000e+00> : vector<8x128xf32>
    %34 = tpu.matmul %16, %33, %cst_28 {dimension_numbers = #tpu.dot_dimension_numbers<[1], [0], [0], [1], [0, 0, 1, 1], [], []>} : vector<8x128xbf16>, vector<128x128xbf16>, vector<8x128xf32> -> vector<8x128xf32>
    %c0_29 = arith.constant 0 : index
    %c0_30 = arith.constant 0 : index
    %35 = vector.load %arg9[%c0_29, %c0_30] : memref<1x128xf32, #tpu.memory_space<vmem>>, vector<1x128xf32>
    %36 = vector.broadcast %35 : vector<1x128xf32> to vector<8x128xf32>
    %37 = arith.addf %34, %36 : vector<8x128xf32>
    %c0_31 = arith.constant 0 : index
    %c0_32 = arith.constant 0 : index
    %38 = vector.load %arg11[%c0_31, %c0_32] : memref<8x128xf32, #tpu.memory_space<vmem>>, vector<8x128xf32>
    tpu.vector_store %arg11[%c0_31, %c0_32], %37 {strides = array<i32>} : memref<8x128xf32, #tpu.memory_space<vmem>>, vector<8x128xf32>,
    return
  }
  func.func @transform_0(%arg0: i32) -> (i32, i32, i32) {
    %c0_i32 = arith.constant 0 : i32
    %c0_i32_0 = arith.constant 0 : i32
    %c0_i32_1 = arith.constant 0 : i32
    %c0_i32_2 = arith.constant 0 : i32
    return %c0_i32, %c0_i32_0, %c0_i32_1 : i32, i32, i32
  }
  func.func @transform_1(%arg0: i32) -> (i32, i32, i32) {
    %c0_i32 = arith.constant 0 : i32
    %c0_i32_0 = arith.constant 0 : i32
    %c0_i32_1 = arith.constant 0 : i32
    %c0_i32_2 = arith.constant 0 : i32
    return %c0_i32, %c0_i32_0, %c0_i32_1 : i32, i32, i32
  }
  func.func @transform_2(%arg0: i32) -> (i32, i32) {
    %c0_i32 = arith.constant 0 : i32
    %c0_i32_0 = arith.constant 0 : i32
    %c0_i32_1 = arith.constant 0 : i32
    return %c0_i32, %c0_i32_0 : i32, i32
  }
  func.func @transform_3(%arg0: i32) -> (i32, i32) {
    %c0_i32 = arith.constant 0 : i32
    %c0_i32_0 = arith.constant 0 : i32
    %c0_i32_1 = arith.constant 0 : i32
    return %c0_i32, %c0_i32_0 : i32, i32
  }
  func.func @transform_4(%arg0: i32) -> (i32, i32) {
    %c0_i32 = arith.constant 0 : i32
    %c0_i32_0 = arith.constant 0 : i32
    %c0_i32_1 = arith.constant 0 : i32
    return %c0_i32, %c0_i32_0 : i32, i32
  }
  func.func @transform_5(%arg0: i32) -> (i32, i32) {
    %c0_i32 = arith.constant 0 : i32
    %c0_i32_0 = arith.constant 0 : i32
    %c0_i32_1 = arith.constant 0 : i32
    return %c0_i32, %c0_i32_0 : i32, i32
  }
  func.func @transform_6(%arg0: i32) -> (i32, i32) {
    %c0_i32 = arith.constant 0 : i32
    %c0_i32_0 = arith.constant 0 : i32
    %c0_i32_1 = arith.constant 0 : i32
    return %c0_i32, %c0_i32_0 : i32, i32
  }
  func.func @transform_7(%arg0: i32) -> (i32, i32) {
    %c0_i32 = arith.constant 0 : i32
    %c0_i32_0 = arith.constant 0 : i32
    %c0_i32_1 = arith.constant 0 : i32
    return %c0_i32, %c0_i32_0 : i32, i32
  }
  func.func @transform_8(%arg0: i32) -> (i32, i32) {
    %c0_i32 = arith.constant 0 : i32
    %c0_i32_0 = arith.constant 0 : i32
    %c0_i32_1 = arith.constant 0 : i32
    return %c0_i32, %c0_i32_0 : i32, i32
  }
  func.func @transform_9(%arg0: i32) -> (i32, i32) {
    %c0_i32 = arith.constant 0 : i32
    %c0_i32_0 = arith.constant 0 : i32
    %c0_i32_1 = arith.constant 0 : i32
    return %c0_i32, %c0_i32_0 : i32, i32
  }
  func.func @transform_10(%arg0: i32) -> (i32, i32) {
    %c0_i32 = arith.constant 0 : i32
    %c0_i32_0 = arith.constant 0 : i32
    %c0_i32_1 = arith.constant 0 : i32
    return %c0_i32, %c0_i32_0 : i32, i32
  }
}

</mosaic_0001>

<bundles_post_ra>
// kernel: forward.2
= control target key start
LH: loop header
LB: loop body
LE: loop exit
PB: predicated region body
PF: predicated region fallthrough
CT: control target
= control target key end

     0   :  { %s555_s12 = smov 0   ;;  %s557_s13 = smov 0   ;;  %s604_s0 = inlined_call_operand.vmem [shape: bf16[4,64,48], index: 0, kind: input, shape index: {}]   ;;  %s605_s1 = inlined_call_operand.vmem [shape: bf16[48,128], index: 1, kind: input, shape index: {}]   ;;  %s606_s2 = inlined_call_operand.vmem [shape: f32[1,128], index: 2, kind: input, shape index: {}]   ;;  %s607_s3 = inlined_call_operand.vmem [shape: f32[4,8,128], index: 3, kind: output, shape index: {}]  }
   0x1   :  { %s559_s14 = smov 0  }
   0x2 LB: > { %s25_s15 = sadd.s32 1, %s529_s13  ;;  %p434_p0 = scmp.ge.s32.totalorder %s533_s14, 1  ;;  %s533_s14 = sphi %s559_s14, %s13_s14   ;;  %s529_s13 = sphi %s557_s13, %s609_s13   ;;  %s525_s12 = sphi %s555_s12, %s608_s12  }
   0x3   : > { %p27_p1 = scmp.ge.s32.totalorder %s25_s15, 4  ;;  %p156_p2 = scmp.lt.s32.totalorder %s533_s14, 5 }
   0x5   : > { %s611_s15 = smov (%p27_p1, %s25_s15), 0  ;;  %p157_p3 = pnand %p434_p0, %p156_p2 }
   0x6   : > { %v504_v0 = vld [vmem:[%s605_s1] sm:$0xff] (!%p157_p3)   ;;  %p184_p4 = scmp.lt.s32.totalorder (!%p157_p3), %s525_s12, 3  ;;  %v505_v1 = vld [vmem:[%s605_s1 + $0x8] sm:$0xff] (!%p157_p3)   ;;  %v506_v2 = vld [vmem:[%s605_s1 + $0x10] sm:$0xff] (!%p157_p3)   ;;  %vm262_vm0 = vcmask (!%p157_p3), 392192  }
   0x7   : > { %160 = sbr.rel (%p157_p3) target bundleno = 253 (0xfd), region = 32  ;;  %460 = vmatprep.subr.bf16.mxu0 (!%p157_p3), %v504_v0  ;;  %474 = vmatprep.subr.bf16.mxu1 (!%p157_p3), %v504_v0  ;;  %v438_v7 = vld [vmem:[%s606_s2] ss:$0 sm:$0xff] (!%p157_p3) }
   0x8   : > { %461 = vmatpush3.bf16.msra.mxu0 (!%p157_p3), %v504_v0  ;;  %477 = vmatpush3.bf16.msra.mxu1 (!%p157_p3), %v504_v0 }
   0x9   : > { %462 = vmatprep.subr.bf16.mxu0 (!%p157_p3), %v505_v1  ;;  %475 = vmatprep.subr.bf16.mxu1 (!%p157_p3), %v505_v1 }
   0xc   : > { %463 = vmatpush3.bf16.msra.mxu0 (!%p157_p3), %v505_v1  ;;  %478 = vmatpush3.bf16.msra.mxu1 (!%p157_p3), %v505_v1 }
   0xd   : > { %464 = vmatprep.subr.bf16.mxu0 (!%p157_p3), %v506_v2  ;;  %476 = vmatprep.subr.bf16.mxu1 (!%p157_p3), %v506_v2 }
   0xe   : > { %s613_s12 = smov (!%p184_p4, %s525_s12), 3 }
   0xf   : > { %s452_s22 = sshll.u32 %s613_s12, 5  ;;  %s437_s28 = sshll.u32 %s613_s12, 3 }
  0x10   : > { %s191_s25 = scalar_lea.vmem %s604_s0, %s452_s22  ;;  %465 = vmatpush3.bf16.msra.mxu0 %v506_v2  ;;  %479 = vmatpush3.bf16.msra.mxu1 %v506_v2  ;;  %s196_s4 = scalar_lea.vmem %s607_s3, %s437_s28 }
  0x11   : > { %v507_v3 = vld [vmem:[%s191_s25] sm:$0xff]   ;;  %v509_v4 = vld [vmem:[%s191_s25 + $0x10] sm:$0xff]   ;;  %v508_v5 = vld [vmem:[%s191_s25 + $0x8] sm:$0xff]  }
  0x12   : > { %466 = vmatprep.mubr.msk.bf16.mxu0 %vm262_vm0, %v507_v3  ;;  %470 = vmatprep.mubr.msk.bf16.mxu1 %vm262_vm0, %v509_v4  ;;  %v510_v6 = vld [vmem:[%s191_s25 + $0x18] sm:$0xff]  }
  0x13   : > { %467 = vmatmul.mubr.msk.bf16.vlgmr.msra.gmra.mrb[0].mxu0 %vm262_vm0, %v508_v5  ;;  %471 = vmatmul.mubr.msk.bf16.vlgmr.msra.gmra.mrb[0].mxu1 %vm262_vm0, %v510_v6 }
  0xe6   : > { %v468_v8 = vpop.f32.mrb[0].mxu0  ;;  %v472_v9 = vpop.f32.mrb[0].mxu1 }
  0xe7   : > { %v309_v10 = vpop.f32.mrb[1].mxu0  ;;  %v325_v11 = vpop.f32.mrb[1].mxu1  ;;  %v318_v17 = vadd.f32 %v468_v8, %v438_v7  ;;  %v334_v29 = vadd.f32 %v472_v9, %v438_v7 }
  0xe8   : > { %v310_v12 = vadd.f32 %v438_v7, %v309_v10  ;;  %v469_v13 = vpop.f32.mrb[2].mxu0  ;;  %v473_v14 = vpop.f32.mrb[2].mxu1  ;;  %v326_v22 = vadd.f32 %v438_v7, %v325_v11 }
  0xe9   : > { %v312_v15 = vpop.f32.mrb[3].mxu0  ;;  %v328_v16 = vpop.f32.mrb[3].mxu1  ;;  %v321_v20 = vadd.f32 %v469_v13, %v438_v7  ;;  %v342_v23 = vmax.f32 %v318_v17, 0.0  ;;  %v337_v32 = vadd.f32 %v473_v14, %v438_v7  ;;  %v346_v34 = vmax.f32 %v334_v29, 0.0 }
  0xea   : > { %v313_v18 = vadd.f32 %v438_v7, %v312_v15  ;;  %v340_v19 = vmax.f32 %v310_v12, 0.0  ;;  %v344_v27 = vmax.f32 %v326_v22, 0.0  ;;  %v329_v28 = vadd.f32 %v438_v7, %v328_v16 }
  0xeb   : > { %v343_v25 = vmax.f32 %v321_v20, 0.0  ;;  %v347_v36 = vmax.f32 %v337_v32, 0.0 }
  0xec   : > { %v341_v21 = vmax.f32 %v313_v18, 0.0  ;;  %v345_v33 = vmax.f32 %v329_v28, 0.0 }
  0xee   : > { %v349_v24 = vadd.f32 %v341_v21, %v340_v19 }
  0xf0   : > { %v350_v26 = vadd.f32 %v349_v24, %v342_v23 }
  0xf2   : > { %v351_v30 = vadd.f32 %v350_v26, %v343_v25 }
  0xf4   : > { %v352_v31 = vadd.f32 %v351_v30, %v344_v27 }
  0xf6   : > { %v353_v35 = vadd.f32 %v352_v31, %v345_v33 }
  0xf8   : > { %v354_v37 = vadd.f32 %v353_v35, %v346_v34 }
  0xfa   : > { %v355_v38 = vadd.f32 %v354_v37, %v347_v36 }
  0xfc   : > { %362 = vst [vmem:[%s196_s4] sm:$0xff] %v355_v38 }
  0xfd PF: > { %s13_s14 = sadd.s32 1, %s533_s14   ;;  %s608_s12 = smov %s529_s13 }
  0xfe   : > { %p10_p5 = scmp.ge.s32.totalorder %s13_s14, 6   ;;  %s609_s13 = smov %s611_s15 }
 0x100   :  { %12 = sbr.rel (!%p10_p5) target bundleno = 2 (0x2), region = 70 }

// kernel: forward.3
= control target key start
LH: loop header
LB: loop body
LE: loop exit
PB: predicated region body
PF: predicated region fallthrough
CT: control target
= control target key end

     0   :  { %v942_v0 = vmov 0.0   ;;  %vm943_vm0 = vmmov 0   ;;  %vm210_vm1 = vcmask 1041409   ;;  %vm212_vm2 = vcmask 1042434   ;;  %s1222_s2 = inlined_call_operand.vmem [shape: bf16[128,128], index: 2, kind: input, shape index: {}]   ;;  %s1223_s0 = inlined_call_operand.vmem [shape: f32[8,8,128], index: 0, kind: input, shape index: {}]   ;;  %s1224_s5 = inlined_call_operand.vmem [shape: bf16[128,128], index: 5, kind: input, shape index: {}]   ;;  %s1225_s4 = inlined_call_operand.vmem [shape: bf16[128,128], index: 4, kind: input, shape index: {}]   ;;  %s1226_s1 = inlined_call_operand.vmem [shape: f32[8,8,128], index: 1, kind: input, shape index: {}]   ;;  %s1227_s7 = inlined_call_operand.vmem [shape: bf16[128,128], index: 7, kind: input, shape index: {}]   ;;  %s1228_s3 = inlined_call_operand.vmem [shape: f32[1,128], index: 3, kind: input, shape index: {}]   ;;  %s1229_s6 = inlined_call_operand.vmem [shape: f32[1,128], index: 6, kind: input, shape index: {}]   ;;  %s1230_s9 = inlined_call_operand.vmem [shape: f32[8,128], index: 9, kind: output, shape index: {0}]   ;;  %s1231_s8 = inlined_call_operand.vmem [shape: f32[1,128], index: 8, kind: input, shape index: {}]   ;;  %s1232_s10 = inlined_call_operand.vmem [shape: f32[8,128], index: 10, kind: output, shape index: {1}]  }
   0x1   :  { %808 = vmatprep.subr.bf16.mxu0 %v942_v0  ;;  %828 = vmatprep.subr.bf16.mxu1 %v942_v0  ;;  %v910_v1 = vld [vmem:[%s1222_s2] sm:$0xff]   ;;  %v911_v2 = vld [vmem:[%s1222_s2 + $0x8] sm:$0xff]   ;;  %v912_v3 = vld [vmem:[%s1222_s2 + $0x10] sm:$0xff]   ;;  %vm214_vm3 = vcmask 1043459   ;;  %vm216_vm4 = vcmask 1044484   ;;  %vm218_vm5 = vcmask 1045509  }
   0x2   :  { %824 = vmatprep.mubr.msk.bf16.mxu0 %vm943_vm0, %v942_v0  ;;  %844 = vmatprep.mubr.msk.bf16.mxu1 %vm943_vm0, %v942_v0  ;;  %v35_v4 = vld [vmem:[%s1223_s0] sm:$0xff]  ;;  %v36_v5 = vld [vmem:[%s1223_s0 + $0x8] sm:$0xff]  ;;  %v37_v6 = vld [vmem:[%s1223_s0 + $0x10] sm:$0xff]  ;;  %vm220_vm6 = vcmask 1046534   ;;  %vm222_vm7 = vcmask 1047559  }
   0x3   :  { %809 = vmatpush3.bf16.msra.mxu0 %v910_v1  ;;  %829 = vmatpush3.bf16.msra.mxu1 %v910_v1  ;;  %v38_v7 = vld [vmem:[%s1223_s0 + $0x18] sm:$0xff]  ;;  %v39_v8 = vld [vmem:[%s1223_s0 + $0x20] sm:$0xff]  ;;  %v40_v9 = vld [vmem:[%s1223_s0 + $0x28] sm:$0xff]  ;;  %v43_v10 = vrot.slane %v35_v4, 4  ;;  %v49_v11 = vrot.slane %v36_v5, 4  ;;  %v55_v12 = vrot.slane %v37_v6, 4 }
   0x4   :  { %810 = vmatprep.subr.bf16.mxu0 %v942_v0  ;;  %830 = vmatprep.subr.bf16.mxu1 %v942_v0  ;;  %v913_v13 = vld [vmem:[%s1222_s2 + $0x18] sm:$0xff]   ;;  %v41_v14 = vld [vmem:[%s1223_s0 + $0x30] sm:$0xff]  ;;  %v61_v16 = vrot.slane %v38_v7, 4  ;;  %v67_v17 = vrot.slane %v39_v8, 4  ;;  %v73_v18 = vrot.slane %v40_v9, 4  ;;  %v914_v31 = vld [vmem:[%s1222_s2 + $0x20] sm:$0xff]  }
   0x5   :  { %v42_v15 = vld [vmem:[%s1223_s0 + $0x38] sm:$0xff]  ;;  %v44_v19 = vadd.f32 %v43_v10, %v35_v4  ;;  %v50_v20 = vadd.f32 %v49_v11, %v36_v5  ;;  %v56_v21 = vadd.f32 %v55_v12, %v37_v6  ;;  %v79_v22 = vrot.slane %v41_v14, 4  ;;  %v915_v48 = vld [vmem:[%s1222_s2 + $0x28] sm:$0xff]   ;;  %v916_v61 = vld [vmem:[%s1222_s2 + $0x30] sm:$0xff]  }
   0x6   :  { %v62_v23 = vadd.f32 %v61_v16, %v38_v7  ;;  %v68_v24 = vadd.f32 %v67_v17, %v39_v8  ;;  %v74_v25 = vadd.f32 %v73_v18, %v40_v9  ;;  %v85_v26 = vrot.slane %v42_v15, 4  ;;  %v99_v7 = vld [vmem:[%s1226_s1] sm:$0xff]  ;;  %v100_v8 = vld [vmem:[%s1226_s1 + $0x8] sm:$0xff] }
   0x7   :  { %811 = vmatpush3.bf16.msra.mxu0 %v911_v2  ;;  %831 = vmatpush3.bf16.msra.mxu1 %v911_v2  ;;  %v45_v27 = vrot.slane %v44_v19, 2  ;;  %v51_v28 = vrot.slane %v50_v20, 2  ;;  %v57_v29 = vrot.slane %v56_v21, 2  ;;  %v80_v30 = vadd.f32 %v79_v22, %v41_v14  ;;  %v102_v14 = vld [vmem:[%s1226_s1 + $0x18] sm:$0xff] }
   0x8   :  { %812 = vmatprep.subr.bf16.mxu0 %v942_v0  ;;  %832 = vmatprep.subr.bf16.mxu1 %v942_v0  ;;  %v63_v32 = vrot.slane %v62_v23, 2  ;;  %v69_v33 = vrot.slane %v68_v24, 2  ;;  %v75_v34 = vrot.slane %v74_v25, 2  ;;  %v86_v35 = vadd.f32 %v85_v26, %v42_v15  ;;  %v917_v15 = vld [vmem:[%s1222_s2 + $0x38] sm:$0xff]  }
   0x9   :  { %v46_v36 = vadd.f32 %v45_v27, %v44_v19  ;;  %v52_v37 = vadd.f32 %v51_v28, %v50_v20  ;;  %v58_v38 = vadd.f32 %v57_v29, %v56_v21  ;;  %v81_v39 = vrot.slane %v80_v30, 2  ;;  %v103_v20 = vld [vmem:[%s1226_s1 + $0x20] sm:$0xff] }
   0xa   :  { %v64_v40 = vadd.f32 %v63_v32, %v62_v23  ;;  %v70_v41 = vadd.f32 %v69_v33, %v68_v24  ;;  %v76_v42 = vadd.f32 %v75_v34, %v74_v25  ;;  %v87_v43 = vrot.slane %v86_v35, 2 }
   0xb   :  { %813 = vmatpush3.bf16.msra.mxu0 %v912_v3  ;;  %833 = vmatpush3.bf16.msra.mxu1 %v912_v3  ;;  %v47_v44 = vrot.slane %v46_v36, 1  ;;  %v53_v45 = vrot.slane %v52_v37, 1  ;;  %v59_v46 = vrot.slane %v58_v38, 1  ;;  %v82_v47 = vadd.f32 %v81_v39, %v80_v30 }
   0xc   :  { %814 = vmatprep.subr.bf16.mxu0 %v942_v0  ;;  %834 = vmatprep.subr.bf16.mxu1 %v942_v0  ;;  %v65_v49 = vrot.slane %v64_v40, 1  ;;  %v71_v50 = vrot.slane %v70_v41, 1  ;;  %v77_v51 = vrot.slane %v76_v42, 1  ;;  %v88_v52 = vadd.f32 %v87_v43, %v86_v35 }
   0xd   :  { %v48_v53 = vadd.f32 %v47_v44, %v46_v36  ;;  %v54_v54 = vadd.f32 %v53_v45, %v52_v37  ;;  %v60_v55 = vadd.f32 %v59_v46, %v58_v38  ;;  %v83_v56 = vrot.slane %v82_v47, 1 }
   0xe   :  { %v66_v57 = vadd.f32 %v65_v49, %v64_v40  ;;  %v72_v58 = vadd.f32 %v71_v50, %v70_v41  ;;  %v78_v59 = vadd.f32 %v77_v51, %v76_v42  ;;  %v89_v60 = vrot.slane %v88_v52, 1  ;;  %v105_v51 = vld [vmem:[%s1226_s1 + $0x30] sm:$0xff] }
   0xf   :  { %815 = vmatpush3.bf16.msra.mxu0 %v913_v13  ;;  %835 = vmatpush3.bf16.msra.mxu1 %v913_v13  ;;  %v84_v62 = vadd.f32 %v83_v56, %v82_v47  ;;  %v91_v63 = vmul.f32 0.015625, %v48_v53  ;;  %v92_v1 = vmul.f32 0.015625, %v54_v54  ;;  %v93_v2 = vmul.f32 0.015625, %v60_v55  ;;  %v101_v13 = vld [vmem:[%s1226_s1 + $0x10] sm:$0xff]  ;;  %v106_v56 = vld [vmem:[%s1226_s1 + $0x38] sm:$0xff] }
  0x10   :  { %816 = vmatprep.subr.bf16.mxu0 %v942_v0  ;;  %836 = vmatprep.subr.bf16.mxu1 %v942_v0  ;;  %v90_v3 = vadd.f32 %v89_v60, %v88_v52  ;;  %v94_v4 = vmul.f32 0.015625, %v66_v57  ;;  %v95_v5 = vmul.f32 0.015625, %v72_v58  ;;  %v96_v6 = vmul.f32 0.015625, %v78_v59  ;;  %v918_v60 = vld [vmem:[%s1224_s5] sm:$0xff]  }
  0x11   :  { %v97_v9 = vmul.f32 0.015625, %v84_v62  ;;  %v180_v10 = vpack.c.bf16 %v91_v63, %v91_v63  ;;  %v181_v11 = vpack.c.bf16 %v92_v1, %v92_v1  ;;  %v182_v12 = vpack.c.bf16 %v93_v2, %v93_v2 }
  0x12   :  { %v98_v16 = vmul.f32 0.015625, %v90_v3  ;;  %v183_v17 = vpack.c.bf16 %v94_v4, %v94_v4  ;;  %v184_v18 = vpack.c.bf16 %v95_v5, %v95_v5  ;;  %v185_v19 = vpack.c.bf16 %v96_v6, %v96_v6 }
  0x13   :  { %817 = vmatpush3.bf16.msra.mxu0 %v914_v31  ;;  %837 = vmatpush3.bf16.msra.mxu1 %v914_v31  ;;  %v186_v21 = vpack.c.bf16 %v97_v9, %v97_v9  ;;  %v202_v22 = vunpack.c.l.b16 %v180_v10  ;;  %v203_v23 = vunpack.c.l.b16 %v181_v11  ;;  %v204_v24 = vunpack.c.l.b16 %v182_v12  ;;  %v104_v31 = vld [vmem:[%s1226_s1 + $0x28] sm:$0xff] }
  0x14   :  { %818 = vmatprep.subr.bf16.mxu0 %v942_v0  ;;  %838 = vmatprep.subr.bf16.mxu1 %v942_v0  ;;  %v187_v25 = vpack.c.bf16 %v98_v16, %v98_v16  ;;  %v205_v26 = vunpack.c.l.b16 %v183_v17  ;;  %v206_v27 = vunpack.c.l.b16 %v184_v18  ;;  %v207_v28 = vunpack.c.l.b16 %v185_v19 }
  0x15   :  { %v208_v29 = vunpack.c.l.b16 %v186_v21  ;;  %v211_v30 = vsel %vm210_vm1, %v203_v23, %v202_v22  ;;  %v107_v32 = vrot.slane %v99_v7, 4  ;;  %v113_v33 = vrot.slane %v100_v8, 4 }
  0x16   :  { %v209_v34 = vunpack.c.l.b16 %v187_v25  ;;  %v213_v35 = vsel %vm212_vm2, %v204_v24, %v211_v30  ;;  %v119_v36 = vrot.slane %v101_v13, 4  ;;  %v125_v37 = vrot.slane %v102_v14, 4 }
  0x17   :  { %819 = vmatpush3.bf16.msra.mxu0 %v915_v48  ;;  %839 = vmatpush3.bf16.msra.mxu1 %v915_v48  ;;  %v215_v38 = vsel %vm214_vm3, %v205_v26, %v213_v35  ;;  %v108_v39 = vadd.f32 %v107_v32, %v99_v7  ;;  %v114_v40 = vadd.f32 %v113_v33, %v100_v8  ;;  %v131_v41 = vrot.slane %v103_v20, 4 }
  0x18   :  { %820 = vmatprep.subr.bf16.mxu0 %v942_v0  ;;  %840 = vmatprep.subr.bf16.mxu1 %v942_v0  ;;  %v217_v42 = vsel %vm216_vm4, %v206_v27, %v215_v38  ;;  %v120_v43 = vadd.f32 %v119_v36, %v101_v13  ;;  %v126_v44 = vadd.f32 %v125_v37, %v102_v14  ;;  %v137_v45 = vrot.slane %v104_v31, 4  ;;  %v920_v14 = vld [vmem:[%s1224_s5 + $0x8] sm:$0xff]  }
  0x19   :  { %v219_v46 = vsel %vm218_vm5, %v207_v28, %v217_v42  ;;  %v109_v47 = vrot.slane %v108_v39, 2  ;;  %v115_v48 = vrot.slane %v114_v40, 2  ;;  %v132_v49 = vadd.f32 %v131_v41, %v103_v20 }
  0x1a   :  { %v221_v50 = vsel %vm220_vm6, %v208_v29, %v219_v46  ;;  %v121_v52 = vrot.slane %v120_v43, 2  ;;  %v127_v53 = vrot.slane %v126_v44, 2  ;;  %v138_v54 = vadd.f32 %v137_v45, %v104_v31  ;;  %v922_v31 = vld [vmem:[%s1224_s5 + $0x10] sm:$0xff]  }
  0x1b   :  { %821 = vmatpush3.bf16.msra.mxu0 %v916_v61  ;;  %841 = vmatpush3.bf16.msra.mxu1 %v916_v61  ;;  %v223_v55 = vsel %vm222_vm7, %v209_v34, %v221_v50  ;;  %v110_v57 = vadd.f32 %v109_v47, %v108_v39  ;;  %v116_v58 = vadd.f32 %v115_v48, %v114_v40  ;;  %v133_v59 = vrot.slane %v132_v49, 2  ;;  %v924_v47 = vld [vmem:[%s1224_s5 + $0x18] sm:$0xff]  }
  0x1c   :  { %822 = vmatprep.subr.bf16.mxu0 %v942_v0  ;;  %842 = vmatprep.subr.bf16.mxu1 %v942_v0  ;;  %v224_v61 = vpack.c.b16 %v223_v55, %v223_v55  ;;  %v122_v62 = vadd.f32 %v121_v52, %v120_v43  ;;  %v128_v63 = vadd.f32 %v127_v53, %v126_v44  ;;  %v139_v1 = vrot.slane %v138_v54, 2 }
  0x1d   :  { %v111_v2 = vrot.slane %v110_v57, 1  ;;  %v117_v3 = vrot.slane %v116_v58, 1  ;;  %v134_v4 = vadd.f32 %v133_v59, %v132_v49  ;;  %v143_v5 = vrot.slane %v105_v51, 4 }
  0x1e   :  { %v123_v6 = vrot.slane %v122_v62, 1  ;;  %v129_v7 = vrot.slane %v128_v63, 1  ;;  %v140_v8 = vadd.f32 %v139_v1, %v138_v54  ;;  %v149_v9 = vrot.slane %v106_v56, 4  ;;  %v919_v1 = vld [vmem:[%s1225_s4] sm:$0xff]  }
  0x1f   :  { %823 = vmatpush3.bf16.msra.mxu0 %v917_v15  ;;  %843 = vmatpush3.bf16.msra.mxu1 %v917_v15  ;;  %v112_v10 = vadd.f32 %v111_v2, %v110_v57  ;;  %v118_v11 = vadd.f32 %v117_v3, %v116_v58  ;;  %v135_v12 = vrot.slane %v134_v4, 1  ;;  %v144_v13 = vadd.f32 %v143_v5, %v105_v51  ;;  %v930_v3 = vld [vmem:[%s1224_s5 + $0x30] sm:$0xff]  }
  0x20   :  { %848 = vmatprep.subr.bf16.mxu0 %v942_v0  ;;  %868 = vmatprep.subr.bf16.mxu1 %v942_v0  ;;  %v124_v15 = vadd.f32 %v123_v6, %v122_v62  ;;  %v130_v16 = vadd.f32 %v129_v7, %v128_v63  ;;  %v141_v17 = vrot.slane %v140_v8, 1  ;;  %v150_v18 = vadd.f32 %v149_v9, %v106_v56  ;;  %v926_v56 = vld [vmem:[%s1224_s5 + $0x20] sm:$0xff]   ;;  %v928_v62 = vld [vmem:[%s1224_s5 + $0x28] sm:$0xff]   ;;  %v923_v5 = vld [vmem:[%s1225_s4 + $0x10] sm:$0xff]  }
  0x21   :  { %v136_v19 = vadd.f32 %v135_v12, %v134_v4  ;;  %v145_v20 = vrot.slane %v144_v13, 2  ;;  %v155_v21 = vmul.f32 0.015625, %v112_v10  ;;  %v156_v22 = vmul.f32 0.015625, %v118_v11  ;;  %v921_v4 = vld [vmem:[%s1225_s4 + $0x8] sm:$0xff]   ;;  %v925_v6 = vld [vmem:[%s1225_s4 + $0x18] sm:$0xff]   ;;  %v927_v7 = vld [vmem:[%s1225_s4 + $0x20] sm:$0xff]  }
  0x22   :  { %825 = vmatmul.mubr.bf16.vlgmr.msra.gmra.mrb[0].mxu0 %v224_v61  ;;  %v142_v23 = vadd.f32 %v141_v17, %v140_v8  ;;  %v151_v24 = vrot.slane %v150_v18, 2  ;;  %v157_v25 = vmul.f32 0.015625, %v124_v15  ;;  %v158_v26 = vmul.f32 0.015625, %v130_v16  ;;  %v929_v8 = vld [vmem:[%s1225_s4 + $0x28] sm:$0xff]   ;;  %v931_v9 = vld [vmem:[%s1225_s4 + $0x30] sm:$0xff]   ;;  %v932_v10 = vld [vmem:[%s1224_s5 + $0x38] sm:$0xff]  }
  0x23   :  { %849 = vmatpush3.bf16.msra.mxu0 %v918_v60  ;;  %864 = vmatprep.mubr.msk.bf16.mxu0 %vm943_vm0, %v942_v0  ;;  %v146_v27 = vadd.f32 %v145_v20, %v144_v13  ;;  %v159_v28 = vmul.f32 0.015625, %v136_v19  ;;  %v316_v29 = vpack.c.bf16 %v155_v21, %v155_v21  ;;  %v317_v30 = vpack.c.bf16 %v156_v22, %v156_v22  ;;  %v933_v11 = vld [vmem:[%s1225_s4 + $0x38] sm:$0xff]   ;;  %v728_v12 = vld [vmem:[%s1228_s3] ss:$0 sm:$0xff] }
  0x24   :  { %850 = vmatprep.subr.bf16.mxu0 %v942_v0  ;;  %v152_v32 = vadd.f32 %v151_v24, %v150_v18  ;;  %v160_v33 = vmul.f32 0.015625, %v142_v23  ;;  %v318_v34 = vpack.c.bf16 %v157_v25, %v157_v25  ;;  %v319_v35 = vpack.c.bf16 %v158_v26, %v158_v26  ;;  %v934_v26 = vld [vmem:[%s1227_s7] sm:$0xff]  }
  0x25   :  { %v147_v36 = vrot.slane %v146_v27, 1  ;;  %v320_v37 = vpack.c.bf16 %v159_v28, %v159_v28  ;;  %v332_v38 = vunpack.c.l.b16 %v316_v29  ;;  %v333_v39 = vunpack.c.l.b16 %v317_v30  ;;  %v935_v28 = vld [vmem:[%s1227_s7 + $0x8] sm:$0xff]   ;;  %v936_v29 = vld [vmem:[%s1227_s7 + $0x10] sm:$0xff]   ;;  %v937_v30 = vld [vmem:[%s1227_s7 + $0x18] sm:$0xff]  }
  0x26   :  { %v153_v40 = vrot.slane %v152_v32, 1  ;;  %v321_v41 = vpack.c.bf16 %v160_v33, %v160_v33  ;;  %v334_v42 = vunpack.c.l.b16 %v318_v34  ;;  %v335_v43 = vunpack.c.l.b16 %v319_v35  ;;  %v940_v33 = vld [vmem:[%s1227_s7 + $0x30] sm:$0xff]   ;;  %v941_v34 = vld [vmem:[%s1227_s7 + $0x38] sm:$0xff]  }
  0x27   :  { %851 = vmatpush3.bf16.msra.mxu0 %v920_v14  ;;  %v148_v44 = vadd.f32 %v147_v36, %v146_v27  ;;  %v336_v45 = vunpack.c.l.b16 %v320_v37  ;;  %v340_v46 = vsel %vm210_vm1, %v333_v39, %v332_v38 }
  0x28   :  { %852 = vmatprep.subr.bf16.mxu0 %v942_v0  ;;  %v154_v48 = vadd.f32 %v153_v40, %v152_v32  ;;  %v337_v49 = vunpack.c.l.b16 %v321_v41  ;;  %v341_v50 = vsel %vm212_vm2, %v334_v42, %v340_v46  ;;  %v939_v32 = vld [vmem:[%s1227_s7 + $0x28] sm:$0xff]   ;;  %v753_v40 = vld [vmem:[%s1229_s6] ss:$0 sm:$0xff] }
  0x29   :  { %v161_v51 = vmul.f32 0.015625, %v148_v44  ;;  %v342_v52 = vsel %vm214_vm3, %v335_v43, %v341_v50 }
  0x2a   :  { %v162_v53 = vmul.f32 0.015625, %v154_v48  ;;  %v343_v54 = vsel %vm216_vm4, %v336_v45, %v342_v52 }
  0x2b   :  { %853 = vmatpush3.bf16.msra.mxu0 %v922_v31  ;;  %v322_v55 = vpack.c.bf16 %v161_v51, %v161_v51  ;;  %v344_v58 = vsel %vm218_vm5, %v337_v49, %v343_v54  ;;  %v938_v31 = vld [vmem:[%s1227_s7 + $0x20] sm:$0xff]  }
  0x2c   :  { %854 = vmatprep.subr.bf16.mxu0 %v942_v0  ;;  %v323_v57 = vpack.c.bf16 %v162_v53, %v162_v53 }
  0x2d   :  { %v338_v59 = vunpack.c.l.b16 %v322_v55 }
  0x2e   :  { %v339_v60 = vunpack.c.l.b16 %v323_v57 }
  0x2f   :  { %855 = vmatpush3.bf16.msra.mxu0 %v924_v47  ;;  %v345_v61 = vsel %vm220_vm6, %v338_v59, %v344_v58 }
  0x30   :  { %856 = vmatprep.subr.bf16.mxu0 %v942_v0  ;;  %v346_v63 = vsel %vm222_vm7, %v339_v60, %v345_v61 }
  0x31   :  { %v347_v2 = vpack.c.b16 %v346_v63, %v346_v63 }
  0x33   :  { %857 = vmatpush3.bf16.msra.mxu0 %v926_v56  ;;  %845 = vmatmul.mubr.bf16.vlgmr.msra.gmra.mrb[0].mxu1 %v347_v2 }
  0x34   :  { %858 = vmatprep.subr.bf16.mxu0 %v942_v0  ;;  %869 = vmatpush3.bf16.msra.mxu1 %v919_v1 }
  0x35   :  { %870 = vmatprep.subr.bf16.mxu1 %v942_v0  ;;  %884 = vmatprep.mubr.msk.bf16.mxu1 %vm943_vm0, %v942_v0 }
  0x37   :  { %859 = vmatpush3.bf16.msra.mxu0 %v928_v62 }
  0x38   :  { %860 = vmatprep.subr.bf16.mxu0 %v942_v0  ;;  %871 = vmatpush3.bf16.msra.mxu1 %v921_v4 }
  0x39   :  { %872 = vmatprep.subr.bf16.mxu1 %v942_v0 }
  0x3b   :  { %861 = vmatpush3.bf16.msra.mxu0 %v930_v3 }
  0x3c   :  { %862 = vmatprep.subr.bf16.mxu0 %v942_v0  ;;  %873 = vmatpush3.bf16.msra.mxu1 %v923_v5 }
  0x3d   :  { %874 = vmatprep.subr.bf16.mxu1 %v942_v0 }
  0x3f   :  { %863 = vmatpush3.bf16.msra.mxu0 %v932_v10 }
  0x40   :  { %875 = vmatpush3.bf16.msra.mxu1 %v925_v6  ;;  %888 = vmatprep.subr.bf16.mxu0 %v942_v0 }
  0x41   :  { %876 = vmatprep.subr.bf16.mxu1 %v942_v0 }
  0x44   :  { %877 = vmatpush3.bf16.msra.mxu1 %v927_v7 }
  0x45   :  { %878 = vmatprep.subr.bf16.mxu1 %v942_v0 }
  0x48   :  { %879 = vmatpush3.bf16.msra.mxu1 %v929_v8 }
  0x49   :  { %880 = vmatprep.subr.bf16.mxu1 %v942_v0 }
  0x4c   :  { %881 = vmatpush3.bf16.msra.mxu1 %v931_v9 }
  0x4d   :  { %882 = vmatprep.subr.bf16.mxu1 %v942_v0 }
  0x50   :  { %883 = vmatpush3.bf16.msra.mxu1 %v933_v11 }
  0xf5   :  { %v308_v13 = vpop.f32.mrb[0].mxu0 }
  0xf6   :  { %v309_v14 = vadd.f32 %v728_v12, %v308_v13  ;;  %v826_v15 = vpop.f32.mrb[1].mxu0 }
  0xf7   :  { %v311_v16 = vpop.f32.mrb[2].mxu0 }
  0xf8   :  { %v314_v17 = vmax.f32 %v309_v14, 0.0  ;;  %v827_v18 = vpop.f32.mrb[3].mxu0 }
  0xfa   :  { %v315_v19 = vpack.c.bf16 %v314_v17, %v314_v17 }
  0xfc   :  { %885 = vmatmul.mubr.bf16.vlgmr.msra.gmra.mrb[4].mxu1 %v315_v19 }
 0x106   :  { %v383_v20 = vpop.f32.mrb[0].mxu1 }
 0x107   :  { %v384_v21 = vadd.f32 %v728_v12, %v383_v20  ;;  %v846_v22 = vpop.f32.mrb[1].mxu1 }
 0x108   :  { %v386_v23 = vpop.f32.mrb[2].mxu1 }
 0x109   :  { %v389_v24 = vmax.f32 %v384_v21, 0.0  ;;  %v847_v25 = vpop.f32.mrb[3].mxu1 }
 0x10b   :  { %v390_v27 = vpack.c.bf16 %v389_v24, %v389_v24 }
 0x10d   :  { %865 = vmatmul.mubr.bf16.vlgmr.msra.gmra.mrb[4].mxu0 %v390_v27 }
 0x10e   :  { %889 = vmatpush3.bf16.msra.mxu0 %v934_v26  ;;  %904 = vmatprep.mubr.msk.bf16.mxu0 %vm943_vm0, %v942_v0 }
 0x10f   :  { %890 = vmatprep.subr.bf16.mxu0 %v942_v0 }
 0x112   :  { %891 = vmatpush3.bf16.msra.mxu0 %v935_v28 }
 0x113   :  { %892 = vmatprep.subr.bf16.mxu0 %v942_v0 }
 0x116   :  { %893 = vmatpush3.bf16.msra.mxu0 %v936_v29 }
 0x117   :  { %894 = vmatprep.subr.bf16.mxu0 %v942_v0 }
 0x11a   :  { %895 = vmatpush3.bf16.msra.mxu0 %v937_v30 }
 0x11b   :  { %896 = vmatprep.subr.bf16.mxu0 %v942_v0 }
 0x11e   :  { %897 = vmatpush3.bf16.msra.mxu0 %v938_v31 }
 0x11f   :  { %898 = vmatprep.subr.bf16.mxu0 %v942_v0 }
 0x122   :  { %899 = vmatpush3.bf16.msra.mxu0 %v939_v32 }
 0x123   :  { %900 = vmatprep.subr.bf16.mxu0 %v942_v0 }
 0x126   :  { %901 = vmatpush3.bf16.msra.mxu0 %v940_v33 }
 0x127   :  { %902 = vmatprep.subr.bf16.mxu0 %v942_v0  ;;  %v754_v0 = vld [vmem:[%s1231_s8] ss:$0 sm:$0xff] }
 0x12a   :  { %903 = vmatpush3.bf16.msra.mxu0 %v941_v34 }
 0x12d   :  { %905 = vmatmul.mubr.bf16.vlgmr.msra.gmra.mrb[8].mxu0 %v315_v19 }
 0x1cf   :  { %v593_v35 = vpop.f32.mrb[4].mxu1 }
 0x1d0   :  { %v886_v36 = vpop.f32.mrb[5].mxu1 }
 0x1d1   :  { %v596_v37 = vpop.f32.mrb[6].mxu1 }
 0x1d2   :  { %v887_v38 = vpop.f32.mrb[7].mxu1 }
 0x1e0   :  { %v505_v39 = vpop.f32.mrb[4].mxu0 }
 0x1e1   :  { %v594_v41 = vadd.f32 %v593_v35, %v505_v39  ;;  %v866_v42 = vpop.f32.mrb[5].mxu0 }
 0x1e2   :  { %v508_v43 = vpop.f32.mrb[6].mxu0 }
 0x1e3   :  { %v606_v44 = vadd.f32 %v753_v40, %v594_v41  ;;  %v867_v45 = vpop.f32.mrb[7].mxu0 }
 0x1e5   :  { %607 = vst [vmem:[%s1230_s9] sm:$0xff] %v606_v44 }
 0x200   :  { %v713_v46 = vpop.f32.mrb[8].mxu0 }
 0x201   :  { %v714_v47 = vadd.f32 %v754_v0, %v713_v46  ;;  %v906_v48 = vpop.f32.mrb[9].mxu0 }
 0x202   :  { %v716_v49 = vpop.f32.mrb[10].mxu0 }
 0x203   :  { %719 = vst [vmem:[%s1232_s10] sm:$0xff] %v714_v47  ;;  %v907_v50 = vpop.f32.mrb[11].mxu0 }

</bundles_post_ra>
